<compile_context>
chip_gen: v6e
topology: v6e:2x2x1
jax: 0.10.0
libtpu: 0.0.40
codegen_flags: <defaults>
</compile_context>

<pallas_src>
import math

import jax
import jax.numpy as jnp
from jax.experimental import pallas as pl
from jax.experimental.pallas import tpu as pltpu


def _round_up(n, q):
    return ((n + q - 1) // q) * q


def _pick_cout_tile(c_out_p, max_tile):
    """Largest divisor of c_out_p that is a multiple of 128 and <= max_tile.

    c_out_p is always a multiple of 128, so 128 is a valid fallback and the
    output store is always lane-dense (no vst.msk partial stores)."""
    best = 128
    t = 128
    while t <= min(c_out_p, max_tile):
        if c_out_p % t == 0:
            best = t
        t += 128
    return best


def _token_embed_kernel(x_ref, w_ref, o_ref):
    # x_ref: (1, TL, K*c_in)  im2col LHS tile
    # w_ref: (K*c_in, TCO)    fused weight tile
    # o_ref: (1, TL, TCO)     output tile
    o_ref[0] = jnp.dot(
        x_ref[0], w_ref[...], preferred_element_type=jnp.float32
    ).astype(o_ref.dtype)


def token_embedding_forward(x, weight, *, kernel=3, stride=1, padding=1,
                            max_seq_tile=1024, max_cout_tile=512,
                            compute_dtype=None, out_dtype=None):
    """x: [B, L, c_in], weight: [c_out, c_in, kernel] (torch Conv1d layout).

    Returns [B, L, c_out], matching
    nn.Conv1d(c_in, c_out, kernel, stride=1, padding=padding, bias=False)
    applied along the sequence axis (the TokenEmbedding forward).
    """
    B, L, c_in = x.shape
    c_out = weight.shape[0]
    assert weight.shape == (c_out, c_in, kernel)
    assert stride == 1, "TokenEmbedding uses stride=1"
    # 'same' conv assumption: output length == L.
    assert 2 * padding == kernel - 1, "requires 2*padding == kernel - 1"

    out_dtype = x.dtype if out_dtype is None else out_dtype

    # ---- wrapper-level im2col (one fused XLA pass over the small-c_in input)
    x_pad = jnp.pad(x, ((0, 0), (padding, padding), (0, 0)))       # (B, L+2p, c_in)
    cols = [x_pad[:, k:k + L, :] for k in range(kernel)]
    x_cols = jnp.concatenate(cols, axis=-1) if kernel > 1 else cols[0]  # (B, L, K*c_in)
    kc = kernel * c_in

    # Fused im2col RHS: row k*c_in + c  <->  weight[:, c, k]   -> (K*c_in, c_out)
    w_fused = jnp.transpose(weight, (2, 1, 0)).reshape(kc, c_out)

    if compute_dtype is not None:
        x_cols = x_cols.astype(compute_dtype)
        w_fused = w_fused.astype(compute_dtype)

    # ---- lane-dense output: pad c_out to a multiple of 128, pick a 128-multiple tile
    c_out_p = _round_up(c_out, 128)
    if c_out_p != c_out:
        w_fused = jnp.pad(w_fused, ((0, 0), (0, c_out_p - c_out)))
    TCO = _pick_cout_tile(c_out_p, max_cout_tile)

    # ---- sequence tiling: keep TL near the cap for any L, pad the tail
    TL = min(max_seq_tile, _round_up(L, 8))
    TL = max(8, (TL // 8) * 8)                   # sublane-aligned
    L_p = _round_up(L, TL)
    if L_p != L:
        x_cols = jnp.pad(x_cols, ((0, 0), (0, L_p - L), (0, 0)))

    # grid = (b, co, l): the weight tile only changes when co changes; the
    # sequence axis is innermost so output stores stream through HBM.
    grid = (B, c_out_p // TCO, L_p // TL)

    out = pl.pallas_call(
        _token_embed_kernel,
        out_shape=jax.ShapeDtypeStruct((B, L_p, c_out_p), out_dtype),
        grid_spec=pltpu.PrefetchScalarGridSpec(
            num_scalar_prefetch=0,
            grid=grid,
            in_specs=[
                # im2col LHS tile; VMEM footprint independent of L.
                pl.BlockSpec((1, TL, kc), lambda b, co, l: (b, l, 0)),
                # Fused weight tile; grid-invariant along b and l.
                pl.BlockSpec((kc, TCO), lambda b, co, l: (0, co)),
            ],
            out_specs=pl.BlockSpec((1, TL, TCO), lambda b, co, l: (b, l, co)),
        ),
        compiler_params=pltpu.CompilerParams(
            dimension_semantics=("parallel", "parallel", "parallel")),
    )(x_cols, w_fused)

    # Slice off the c_out / sequence padding (no-op when shapes were aligned).
    return out[:, :L, :c_out]


def init_token_embedding_weight(key, c_in, c_out, kernel=3):
    """kaiming_normal_(mode='fan_in', nonlinearity='leaky_relu') init for the
    Conv1d weight of shape [c_out, c_in, kernel] (matches the torch module)."""
    fan_in = c_in * kernel
    negative_slope = 0.01  # PyTorch default gain arg for leaky_relu
    gain = math.sqrt(2.0 / (1.0 + negative_slope ** 2))
    std = gain / math.sqrt(fan_in)
    return std * jax.random.normal(key, (c_out, c_in, kernel), dtype=jnp.float32)


def _reference_conv1d(x, weight, padding=1):
    """Pure-JAX reference of the TokenEmbedding forward for verification."""
    x_ncl = jnp.transpose(x, (0, 2, 1))                       # [B, c_in, L]
    y = jax.lax.conv_general_dilated(
        x_ncl, weight,
        window_strides=(1,), padding=[(padding, padding)],
        dimension_numbers=("NCH", "OIH", "NCH"))
    return jnp.transpose(y, (0, 2, 1))                        # [B, L, c_out]


if __name__ == "__main__":
    key = jax.random.PRNGKey(0)
    kx, kw, kx2, kw2 = jax.random.split(key, 4)

    # ---- Config 1: small TokenEmbedding-like shapes (aligned-ish) ----------
    B, L, c_in, c_out, K = 2, 16, 4, 32, 3
    x = jax.random.normal(kx, (B, L, c_in), dtype=jnp.float32)
    w = init_token_embedding_weight(kw, c_in, c_out, kernel=K)
    ref = _reference_conv1d(x, w, padding=1)

    out = jax.block_until_ready(
        token_embedding_forward(x, w, kernel=K, padding=1))
    assert out.shape == (B, L, c_out)
    assert jnp.allclose(out, ref, atol=1e-5, rtol=1e-5)

    # Force sequence tiling (grid l-axis = 2) to exercise tile boundaries.
    out_t = jax.block_until_ready(
        token_embedding_forward(x, w, kernel=K, padding=1, max_seq_tile=8))
    assert jnp.allclose(out_t, ref, atol=1e-5, rtol=1e-5)

    # ---- Config 2: awkward L (tail padding), c_out tiling, bf16 output -----
    B2, L2, c_in2, c_out2 = 1, 19, 7, 200
    x2 = jax.random.normal(kx2, (B2, L2, c_in2), dtype=jnp.float32)
    w2 = init_token_embedding_weight(kw2, c_in2, c_out2, kernel=K)
    ref2 = _reference_conv1d(x2, w2, padding=1)

    out2 = jax.block_until_ready(
        token_embedding_forward(x2, w2, kernel=K, padding=1, max_cout_tile=128))
    assert out2.shape == (B2, L2, c_out2)
    assert jnp.allclose(out2, ref2, atol=1e-5, rtol=1e-5)

    out2_bf16 = jax.block_until_ready(
        token_embedding_forward(x2, w2, kernel=K, padding=1,
                                out_dtype=jnp.bfloat16))
    assert out2_bf16.dtype == jnp.bfloat16
    assert jnp.allclose(out2_bf16.astype(jnp.float32), ref2,
                        atol=2e-2, rtol=2e-2)

    print("KERNEL_OK")
</pallas_src>

<mosaic_0001>
module attributes {stable_mosaic.version = 11 : i64} {
  func.func @_token_embed_kernel(%arg0: i32, %arg1: i32, %arg2: i32, %arg3: memref<1x16x12xf32, #tpu.memory_space<vmem>>, %arg4: memref<12x128xf32, #tpu.memory_space<vmem>>, %arg5: memref<1x16x128xf32, #tpu.memory_space<vmem>>) attributes {dimension_semantics = [#tpu.dimension_semantics<parallel>, #tpu.dimension_semantics<parallel>, #tpu.dimension_semantics<parallel>], iteration_bounds = array<i64: 2, 1, 1>, scalar_prefetch = 0 : i64, scratch_operands = 0 : i64, tpu.core_type = #tpu.core_type<tc>, window_params = [{transform_indices = @transform_0, window_bounds = array<i64: 1, 16, 12>}, {transform_indices = @transform_1, window_bounds = array<i64: 12, 128>}, {transform_indices = @transform_2, window_bounds = array<i64: 1, 16, 128>}]} {
    %c0 = arith.constant 0 : index
    %c0_0 = arith.constant 0 : index
    %c0_1 = arith.constant 0 : index
    %0 = vector.load %arg3[%c0, %c0_0, %c0_1] : memref<1x16x12xf32, #tpu.memory_space<vmem>>, vector<1x16x12xf32>
    %1 = vector.shape_cast %0 : vector<1x16x12xf32> to vector<16x12xf32>
    %c0_2 = arith.constant 0 : index
    %c0_3 = arith.constant 0 : index
    %2 = vector.load %arg4[%c0_2, %c0_3] : memref<12x128xf32, #tpu.memory_space<vmem>>, vector<12x128xf32>
    %cst = arith.constant dense<0.000000e+00> : vector<16x128xf32>
    %3 = tpu.matmul %1, %2, %cst {dimension_numbers = #tpu.dot_dimension_numbers<[1], [0], [0], [1], [0, 0, 1, 1], [], []>} : vector<16x12xf32>, vector<12x128xf32>, vector<16x128xf32> -> vector<16x128xf32>
    %c0_4 = arith.constant 0 : index
    %c0_5 = arith.constant 0 : index
    %c0_6 = arith.constant 0 : index
    %4 = vector.load %arg5[%c0_4, %c0_5, %c0_6] : memref<1x16x128xf32, #tpu.memory_space<vmem>>, vector<1x16x128xf32>
    %5 = vector.shape_cast %4 : vector<1x16x128xf32> to vector<16x128xf32>
    %6 = vector.shape_cast %3 : vector<16x128xf32> to vector<1x16x128xf32>
    tpu.vector_store %arg5[%c0_4, %c0_5, %c0_6], %6 {strides = array<i32>} : memref<1x16x128xf32, #tpu.memory_space<vmem>>, vector<1x16x128xf32>,
    return
  }
  func.func @transform_0(%arg0: i32, %arg1: i32, %arg2: i32) -> (i32, i32, i32) {
    %c0_i32 = arith.constant 0 : i32
    %c0_i32_0 = arith.constant 0 : i32
    return %arg0, %arg2, %c0_i32 : i32, i32, i32
  }
  func.func @transform_1(%arg0: i32, %arg1: i32, %arg2: i32) -> (i32, i32) {
    %c0_i32 = arith.constant 0 : i32
    %c0_i32_0 = arith.constant 0 : i32
    return %c0_i32, %arg1 : i32, i32
  }
  func.func @transform_2(%arg0: i32, %arg1: i32, %arg2: i32) -> (i32, i32, i32) {
    %c0_i32 = arith.constant 0 : i32
    return %arg0, %arg2, %arg1 : i32, i32, i32
  }
}

</mosaic_0001>

<bundles_post_ra>
// kernel: tpu_custom_call.1
= control target key start
LH: loop header
LB: loop body
LE: loop exit
PB: predicated region body
PF: predicated region fallthrough
CT: control target
= control target key end

     0   :  { %7 = vsyncpa [#allocation3], 0  ;;  %s709_s0 = inlined_call_operand.vmem [shape: f32[2,16,12], index: 0, kind: input, shape index: {}]   ;;  %s710_s1 = inlined_call_operand.vmem [shape: f32[12,128], index: 1, kind: input, shape index: {}]   ;;  %s711_s2 = inlined_call_operand.hbm [shape: f32[2,16,128], index: 2, kind: output, shape index: {}]  }
   0x1   :  { %9 = vsyncpa [#allocation3 + $0x1], 0  ;;  %s589_s9 = smov 0   ;;  %s591_s10 = smov 0  }
   0x2   :  { %s593_s11 = smov 0   ;;  %s595_s12 = smov 0  }
   0x3   :  { %s597_s13 = smov 0   ;;  %s599_s14 = smov 0  }
   0x4 LB: > { %s406_s15 = sadd.s32 4294967295, %s569_s14   ;;  %s407_s16 = sadd.s32 4294967294, %s569_s14   ;;  %s569_s14 = sphi %s599_s14, %s15_s14   ;;  %s565_s13 = sphi %s597_s13, %s718_s13   ;;  %s561_s12 = sphi %s595_s12, %s717_s12   ;;  %s557_s11 = sphi %s593_s11, %s716_s11   ;;  %s553_s10 = sphi %s591_s10, %s715_s10   ;;  %s549_s9 = sphi %s589_s9, %s714_s9  }
   0x5   : > { %s34_s17 = sadd.s32 1, %s565_s13  ;;  %s99_s18 = sadd.s32 1, %s557_s11 }
   0x6   : > { %p36_p0 = scmp.ge.s32.totalorder %s34_s17, 2  ;;  %p109_p1 = scmp.ne.s32.totalorder %s557_s11, %s553_s10 }
   0x7   : > { %p110_p2 = scmp.eq.s32.totalorder %s406_s15, 1  ;;  %p115_p3 = scmp.ne.s32.totalorder %s553_s10, %s549_s9 }
   0x8   : > { %s720_s17 = smov (%p36_p0, %s34_s17), 0  ;;  %p116_p5 = scmp.eq.s32.totalorder %s407_s16, 1 }
   0x9   : > { %p629_p4 = por %p110_p2, %p109_p1  ;;  %s92_s20 = ssub.s32 %s565_s13, %s720_s17 }
   0xa   : > { %p411_p6 = scmp.ge.s32.totalorder %s569_s14, 1  ;;  %p97_p7 = scmp.eq.s32.totalorder %s92_s20, 0 }
   0xb   : > { %p636_p8 = por %p116_p5, %p115_p3  ;;  %p154_p9 = scmp.lt.s32.totalorder %s569_s14, 3 }
   0xc   : > { %s642_s22 = scalar_select %p97_p7, %s557_s11, %s99_s18  }
   0xd   : > { %p155_p10 = pnand %p411_p6, %p154_p9 }
   0xe   : > { %p185_p11 = scmp.lt.s32.totalorder (!%p155_p10), %s561_s12, 1  ;;  %s181_s4 = sand.u32 (!%p155_p10), 1, %s553_s10  }
   0xf   : > { %158 = sbr.rel (%p155_p10) target bundleno = 235 (0xeb), region = 28  ;;  %s412_s5 = sshll.u32 (!%p155_p10), %s181_s4, 4 }
  0x10   : > { %s183_s6 = scalar_lea.vmem (!%p155_p10), [#allocation2], %s412_s5  ;;  %s424_s8 = sshll.u32 (!%p155_p10), %s561_s12, 8 }
  0x11   : > { %s308_s7 = sshll.u32 (!%p155_p10), %s183_s6, 4  ;;  %s662_s18 = scalar_lea.hbm (!%p155_p10), %s711_s2, %s424_s8  ;;  %s657_s7 = int_to_ptr.vmem [resolvable:$true] %s308_s7 }
  0x12   : > { %s664_s20 = scalar_lea.sflag (!%p155_p10), [#allocation3], %s181_s4  ;;  %s493_s23 = scalar_lea.vmem (!%p155_p10), %s657_s7, 256 }
  0x13   : > { %p494_p12 = scmp.ne.s32.totalorder (!%p155_p10), %s657_s7, %s493_s23 }
  0x14   : > { %v202_v0 = vld [vmem:[%s710_s1 + $0x8] sm:$0xf]  ;;  %vm210_vm0 = vcmask 1043456   ;;  %v201_v1 = vld [vmem:[%s710_s1] sm:$0xff]  ;;  %s186_s27 = scalar_select %p185_p11, %s561_s12, 1  ;;  %vm203_vm1 = vcmask 97280  }
  0x15   : > { %429 = vmatprep.subr.msk.mxu0 %vm210_vm0, %v202_v0  ;;  %p495_p13 = pnand %p494_p12, %p629_p4  ;;  %s571_s12 = smov [#allocation2]  }
  0x16   : > { %430 = vmatpush3.msk.msra.mxu0 %vm210_vm0, %v202_v0  ;;  %s423_s28 = sshll.u32 %s186_s27, 4  ;;  %s497_s24 = sshll.u32 %s571_s12, 4  ;;  %s498_s24 = int_to_ptr.vmem [resolvable:$false] %s497_s24 }
  0x17   : > { %431 = vmatprep.subr.mxu0 %v201_v1  ;;  %s192_s3 = scalar_lea.vmem %s709_s0, %s423_s28  ;;  %p496_p0 = pneg %p495_p13 }
  0x18   : > { %432 = vmatpush3.msra.mxu0 %v201_v1  ;;  %v199_v2 = vld [vmem:[%s192_s3] sm:$0xff]  ;;  %v200_v3 = vld [vmem:[%s192_s3 + $0x8] sm:$0xff]  ;;  %s499_s25 = scalar_lea.vmem %s498_s24, 512  ;;  %p500_p1 = scmp.lt.s32.totalorder %s657_s7, %s498_s24 }
  0x19   : > { %433 = vmatprep.mubr.msk.f32.mxu0 %vm203_vm1, %v199_v2  ;;  %p501_p2 = scmp.lt.s32.totalorder %s499_s25, %s493_s23 }
  0x1a   : > { %434 = vmatmul.mubr.msk.f32.vlgmr.msra.gmra.mxu0 %vm203_vm1, %v200_v3 }
  0x1b   : > { %p502_p3 = por %p501_p2, %p500_p1 }
  0x1d   : > { %p503_p5 = pnand %p502_p3, %p496_p0 }
  0xda   : > { %v435_v4 = vpop.f32.mrf.mxu0 }
  0xdb   : > { %290 = vst [vmem:[%s183_s6 + $0x8] sm:$0xff] %v435_v4 }
  0xdc   : > { %v280_v5 = vpop.f32.mrf.mxu0 }
  0xdd   : > { %289 = vst [vmem:[%s183_s6] sm:$0xff] %v280_v5 }
  0xde   : > { %506 = shalt.err (!%p503_p5)
}
  0xdf   : > { %s507_s26 = scalar_lea.hbm %s662_s18, 256  ;;  %s511_s29 = scalar_lea.hbm %s711_s2, 512 }
  0xe0   : > { %p508_p6 = scmp.ne.s32.totalorder %s662_s18, %s507_s26  ;;  %p512_p10 = scmp.lt.s32.totalorder %s662_s18, %s711_s2 }
  0xe1   : > { %p513_p11 = scmp.lt.s32.totalorder %s511_s29, %s507_s26 }
  0xe2   : > { %p509_p7 = pnand %p508_p6, %p629_p4 }
  0xe3   : > { %p514_p12 = por %p513_p11, %p512_p10 }
  0xe4   : > { %p510_p9 = pneg %p509_p7 }
  0xe6   : > { %p515_p13 = pnand %p514_p12, %p510_p9 }
  0xe8   : > { %518 = shalt.err (!%p515_p13)
}
  0xe9   : > { %s572_s4 = smov 128   ;;  %s573_s5 = smov 8  }
  0xea   : > { %436 = dma.vmem_to_hbm [thread:$0]  (%p629_p4), %s657_s7, 256, %s662_s18, %s664_s20, %s572_s4, %s572_s4, %s573_s5  }
  0xeb PF: > { %p442_p0 = scmp.ge.s32.totalorder %s569_s14, 2  ;;  %s323_s6 = sand.u32 1, %s549_s9  }
  0xec   : > { %s324_s8 = scalar_lea.sflag [#allocation3], %s323_s6 }
  0xed   : > { %p439_p1 = pnand %p442_p0, %p636_p8 }
  0xef   : > { %p440_p2 = pneg %p439_p1 }
  0xf1   : > { %544 = dma.done.wait (%p440_p2), %s324_s8, 256  }
  0xf2   : > { %546 = vsyncadd (%p440_p2), %s324_s8, 4294967040  ;;  %s15_s14 = sadd.s32 1, %s569_s14   ;;  %s714_s9 = smov %s553_s10 }
  0xf3   : > { %p12_p3 = scmp.ge.s32.totalorder %s15_s14, 4   ;;  %s715_s10 = smov %s557_s11 }
  0xf4   : > { %s716_s11 = smov %s642_s22  ;;  %s717_s12 = smov %s565_s13 }
  0xf5   : > { %s718_s13 = smov %s720_s17  ;;  %14 = sbr.rel (!%p12_p3) target bundleno = 4 (0x4), region = 66 }
  0xfa   :  { %329 = vsyncpa [#allocation3], 1 }
  0xfb   :  { %331 = vsyncpa [#allocation3 + $0x1], 1 }

</bundles_post_ra>
